<compile_context>
chip_gen: v7x
topology: tpu7x:2x2x1
jax: 0.10.0
libtpu: 0.0.40
codegen_flags: <defaults>
</compile_context>

<pallas_src>
import functools

import jax
import jax.numpy as jnp
from jax import lax
from jax.experimental import pallas as pl
from jax.experimental.pallas import tpu as pltpu

BN_EPS = 1e-5
LANE = 128


def _round_up(x, m):
    return (x + m - 1) // m * m


def _pick_vmem_limit():
    """Generation-aware scoped-VMEM limit: ~75% of physical, capped at 100 MiB."""
    try:
        cap = pltpu.get_tpu_info().vmem_capacity_bytes
        return min(100 * 1024 * 1024, int(cap) * 3 // 4)
    except Exception:
        return 32 * 1024 * 1024  # safe on every generation


_VMEM_LIMIT_BYTES = _pick_vmem_limit()


# ---------------------------------------------------------------------------
# Pass A: h = x @ w1; per-sublane partial sum / sum-of-squares accumulators
# (resident output blocks across the reduction axis), optionally storing h.
# ---------------------------------------------------------------------------
def _bn_stats_kernel(x_ref, w1_ref, *out_refs):
    # out_refs = (sum_ref[8,hp], sumsq_ref[8,hp]) or (+ h_ref[TN,hp] bf16).
    sum_ref, sumsq_ref = out_refs[0], out_refs[1]

    h = jnp.dot(x_ref[...], w1_ref[...], preferred_element_type=jnp.float32)  # [TN, hp]

    if len(out_refs) == 3:            # static (decided by number of outputs at trace time)
        out_refs[2][...] = h.astype(jnp.bfloat16)

    @pl.when(pl.program_id(1) == 0)   # first step of this shard's reduction
    def _():
        sum_ref[...] = jnp.zeros_like(sum_ref)
        sumsq_ref[...] = jnp.zeros_like(sumsq_ref)

    # Fold rows mod 8: reducing the leading axis of (TN/8, 8, hp) is plain vreg adds
    # (VPU); the single cross-sublane reduce happens later in the wrapper.
    tn, hp = h.shape
    h3 = h.reshape(tn // 8, 8, hp)
    sum_ref[...] += jnp.sum(h3, axis=0)
    sumsq_ref[...] += jnp.sum(h3 * h3, axis=0)


# ---------------------------------------------------------------------------
# Pass B: (Linear ->) BN(folded affine) -> ReLU -> Linear(+bias) per batch tile.
# Two variants: recompute h = x @ w1, or read the bf16 h stored by pass A.
# ---------------------------------------------------------------------------
def _mlp_fwd_from_x_kernel(x_ref, w1_ref, affine_ref, w2_ref, b2_ref, o_ref):
    h = jnp.dot(x_ref[...], w1_ref[...], preferred_element_type=jnp.float32)  # [TN, hp]
    aff = affine_ref[...]                       # (2, hp): row0 = scale, row1 = shift
    h_act = jnp.maximum(h * aff[0:1, :] + aff[1:2, :], 0.0)
    y = jnp.dot(h_act.astype(jnp.bfloat16), w2_ref[...],
                preferred_element_type=jnp.float32) + b2_ref[...]
    o_ref[...] = y.astype(o_ref.dtype)


def _mlp_fwd_from_h_kernel(h_ref, affine_ref, w2_ref, b2_ref, o_ref):
    h = h_ref[...].astype(jnp.float32)          # bf16 h stored by pass A
    aff = affine_ref[...]
    h_act = jnp.maximum(h * aff[0:1, :] + aff[1:2, :], 0.0)
    y = jnp.dot(h_act.astype(jnp.bfloat16), w2_ref[...],
                preferred_element_type=jnp.float32) + b2_ref[...]
    o_ref[...] = y.astype(o_ref.dtype)


# ---------------------------------------------------------------------------
# Wrapper: layout plumbing (conditional pad, pre-transpose, bf16 cast), two
# pallas_calls, and the one-shot BN-affine fold in between.
# ---------------------------------------------------------------------------
def _pad2d(a, rows, cols, dtype):
    r, c = a.shape
    if (r, c) == (rows, cols):
        return a.astype(dtype)                  # aligned: cast only, no pad copy
    return jnp.zeros((rows, cols), dtype).at[:r, :c].set(a.astype(dtype))


def _pad_row(v, cols):
    out = jnp.zeros((1, cols), jnp.float32)
    return out.at[0, : v.shape[0]].set(v.astype(jnp.float32))


@functools.partial(jax.jit, static_argnames=("block_n", "store_hidden", "out_dtype"))
def mlp_forward(x, w1, gamma, beta, w2, b2, *,
                block_n=512, store_hidden=None, out_dtype=jnp.float32):
    n, d_in = x.shape
    hidden = w1.shape[0]
    d_out = w2.shape[0]

    dp = _round_up(d_in, LANE)
    hp = _round_up(hidden, LANE)
    op = _round_up(d_out, LANE)

    # Batch tile: default 512 rows, clamped to the lane-aligned batch and re-aligned.
    block_n = max(LANE, _round_up(min(block_n, _round_up(n, LANE)), LANE))
    npad = _round_up(n, block_n)
    n_tiles = npad // block_n

    if store_hidden is None:
        # Recompute x@w1 in pass B when d_in is small (free under the memory roofline);
        # store h when d_in is large (break-even ~240 v5e / ~310 v7x / ~650 v6e).
        store_hidden = dp >= 512

    # Layout plumbing: pre-transposed, lane-padded bf16 weights; padded rows/cols are
    # zero so they contribute nothing to stats or matmuls (stats divide by the true n).
    xp = _pad2d(x, npad, dp, jnp.bfloat16)
    w1p = _pad2d(w1.T, dp, hp, jnp.bfloat16)
    w2p = _pad2d(w2.T, hp, op, jnp.bfloat16)
    gammap = _pad_row(gamma, hp)
    betap = _pad_row(beta, hp)
    b2p = _pad_row(b2, op)

    # ---- Pass A: BN statistics.  Grid (shards, tiles_per_shard); leading axis is
    # "parallel" so v7x splits the reduction across its two TensorCores.
    shards = 2 if (n_tiles >= 2 and n_tiles % 2 == 0) else 1
    tiles_per_shard = n_tiles // shards

    stats_out_shape = [jax.ShapeDtypeStruct((shards * 8, hp), jnp.float32),
                       jax.ShapeDtypeStruct((shards * 8, hp), jnp.float32)]
    stats_out_specs = [pl.BlockSpec((8, hp), lambda s, i: (s, 0)),
                       pl.BlockSpec((8, hp), lambda s, i: (s, 0))]
    if store_hidden:
        stats_out_shape.append(jax.ShapeDtypeStruct((npad, hp), jnp.bfloat16))
        stats_out_specs.append(
            pl.BlockSpec((block_n, hp), lambda s, i: (s * tiles_per_shard + i, 0)))

    outs = pl.pallas_call(
        _bn_stats_kernel,
        out_shape=tuple(stats_out_shape),
        grid=(shards, tiles_per_shard),
        in_specs=[pl.BlockSpec((block_n, dp), lambda s, i: (s * tiles_per_shard + i, 0)),
                  pl.BlockSpec((dp, hp), lambda s, i: (0, 0))],     # resident weights
        out_specs=tuple(stats_out_specs),
        compiler_params=pltpu.CompilerParams(
            dimension_semantics=("parallel", "arbitrary"),
            vmem_limit_bytes=_VMEM_LIMIT_BYTES),
    )(xp, w1p)
    h_sum, h_sumsq = outs[0], outs[1]
    h_stored = outs[2] if store_hidden else None

    # ---- Fold BatchNorm into one per-feature affine, ONCE, in the wrapper (tiny op).
    inv_n = 1.0 / n                                    # true (unpadded) batch size
    mean = jnp.sum(h_sum, axis=0, keepdims=True) * inv_n          # (1, hp)
    ex2 = jnp.sum(h_sumsq, axis=0, keepdims=True) * inv_n
    var = jnp.maximum(ex2 - mean * mean, 0.0)          # E[h^2]-E[h]^2, clamped
    scale = gammap * lax.rsqrt(var + BN_EPS)
    shift = betap - mean * scale
    affine = jnp.concatenate([scale, shift], axis=0)   # (2, hp): scale / shift

    # ---- Pass B: per-tile affine + ReLU + second matmul; tiles are independent.
    if store_hidden:
        kernel = _mlp_fwd_from_h_kernel
        in_arrays = (h_stored, affine, w2p, b2p)
        in_specs = [pl.BlockSpec((block_n, hp), lambda i: (i, 0)),
                    pl.BlockSpec((2, hp), lambda i: (0, 0)),
                    pl.BlockSpec((hp, op), lambda i: (0, 0)),
                    pl.BlockSpec((1, op), lambda i: (0, 0))]
    else:
        kernel = _mlp_fwd_from_x_kernel
        in_arrays = (xp, w1p, affine, w2p, b2p)
        in_specs = [pl.BlockSpec((block_n, dp), lambda i: (i, 0)),
                    pl.BlockSpec((dp, hp), lambda i: (0, 0)),
                    pl.BlockSpec((2, hp), lambda i: (0, 0)),
                    pl.BlockSpec((hp, op), lambda i: (0, 0)),
                    pl.BlockSpec((1, op), lambda i: (0, 0))]

    yp = pl.pallas_call(
        kernel,
        out_shape=jax.ShapeDtypeStruct((npad, op), out_dtype),
        grid=(n_tiles,),
        in_specs=in_specs,
        out_specs=pl.BlockSpec((block_n, op), lambda i: (i, 0)),   # lane-dense store
        compiler_params=pltpu.CompilerParams(
            dimension_semantics=("parallel",),
            vmem_limit_bytes=_VMEM_LIMIT_BYTES),
    )(*in_arrays)

    return yp[:n, :d_out]


# ---------------------------------------------------------------------------
# Reference + init
# ---------------------------------------------------------------------------
def init_params(key, input_dim, hidden_dim, output_dim):
    """PyTorch-default-style initialization (uniform +- 1/sqrt(fan_in))."""
    k1, k2, k3 = jax.random.split(key, 3)
    bound1 = 1.0 / jnp.sqrt(input_dim)
    bound2 = 1.0 / jnp.sqrt(hidden_dim)
    w1 = jax.random.uniform(k1, (hidden_dim, input_dim), jnp.float32, -bound1, bound1)
    gamma = jnp.ones((hidden_dim,), jnp.float32)   # BatchNorm weight
    beta = jnp.zeros((hidden_dim,), jnp.float32)   # BatchNorm bias
    w2 = jax.random.uniform(k2, (output_dim, hidden_dim), jnp.float32, -bound2, bound2)
    b2 = jax.random.uniform(k3, (output_dim,), jnp.float32, -bound2, bound2)
    return w1, gamma, beta, w2, b2


def mlp_reference(x, w1, gamma, beta, w2, b2, *, bf16_matmul=True, quantize_hidden=False):
    """Pure-JAX reference mirroring the PyTorch forward (training-mode BN).

    bf16_matmul=True mirrors the kernel's bf16-operand / f32-accumulate MXU precision.
    quantize_hidden=True mirrors the stored-hidden fast path (h rounded to bf16 after
    the stats are computed, before the BN affine).
    """
    cast = (lambda a: a.astype(jnp.bfloat16)) if bf16_matmul else (lambda a: a)
    h = jnp.dot(cast(x), cast(w1).T, preferred_element_type=jnp.float32)
    mean = jnp.mean(h, axis=0, keepdims=True)
    var = jnp.mean((h - mean) ** 2, axis=0, keepdims=True)
    if quantize_hidden:
        h = h.astype(jnp.bfloat16).astype(jnp.float32)
    h = (h - mean) * lax.rsqrt(var + BN_EPS) * gamma[None, :] + beta[None, :]
    h = jnp.maximum(h, 0.0)
    return jnp.dot(cast(h), cast(w2).T, preferred_element_type=jnp.float32) + b2[None, :]


if __name__ == "__main__":
    # Small but tiling-meaningful shapes: sub-128 feature dims (lane-padded to 128),
    # batch 256 (one 256-row tile with the auto block, two 128-row tiles when forced).
    N, INPUT_DIM, HIDDEN_DIM, OUTPUT_DIM = 256, 32, 64, 16

    key = jax.random.PRNGKey(0)
    kx, kp = jax.random.split(key)
    x = jax.random.normal(kx, (N, INPUT_DIM), jnp.float32)
    w1, gamma, beta, w2, b2 = init_params(kp, INPUT_DIM, HIDDEN_DIM, OUTPUT_DIM)

    ref_bf16 = mlp_reference(x, w1, gamma, beta, w2, b2, bf16_matmul=True)
    ref_f32 = mlp_reference(x, w1, gamma, beta, w2, b2, bf16_matmul=False)

    # Path 1: defaults (auto tile size, recompute-h pass B since d_in is small).
    out = jax.block_until_ready(mlp_forward(x, w1, gamma, beta, w2, b2))
    assert out.shape == (N, OUTPUT_DIM)
    assert jnp.allclose(out, ref_bf16, atol=2e-3, rtol=2e-3), "mismatch vs bf16-matmul reference"
    assert jnp.allclose(out, ref_f32, atol=5e-2, rtol=5e-2), "mismatch vs f32 reference"

    # Path 2: force multi-tile grid (2 tiles -> 2-shard stats pass) and the
    # stored-hidden (large-d_in) fast path to exercise that code path too.
    out2 = jax.block_until_ready(
        mlp_forward(x, w1, gamma, beta, w2, b2, block_n=128, store_hidden=True))
    ref_q = mlp_reference(x, w1, gamma, beta, w2, b2, bf16_matmul=True, quantize_hidden=True)
    assert out2.shape == (N, OUTPUT_DIM)
    assert jnp.allclose(out2, ref_q, atol=5e-3, rtol=5e-3), "mismatch vs stored-h reference"
    assert jnp.allclose(out2, ref_f32, atol=5e-2, rtol=5e-2), "mismatch vs f32 reference"

    print("KERNEL_OK")
</pallas_src>

<mosaic_0001>
module attributes {stable_mosaic.version = 11 : i64} {
  func.func @_bn_stats_kernel(%arg0: i32, %arg1: i32, %arg2: memref<256x128xbf16, #tpu.memory_space<vmem>>, %arg3: memref<128x128xbf16, #tpu.memory_space<vmem>>, %arg4: memref<8x128xf32, #tpu.memory_space<vmem>>, %arg5: memref<8x128xf32, #tpu.memory_space<vmem>>) attributes {dimension_semantics = [#tpu.dimension_semantics<parallel>, #tpu.dimension_semantics<arbitrary>], iteration_bounds = array<i64: 1, 1>, scalar_prefetch = 0 : i64, scratch_operands = 0 : i64, tpu.core_type = #tpu.core_type<tc>, window_params = [{transform_indices = @transform_0, window_bounds = array<i64: 256, 128>}, {pipeline_mode = #tpu.pipeline_mode<synchronous>, transform_indices = @transform_1, window_bounds = array<i64: 128, 128>}, {transform_indices = @transform_2, window_bounds = array<i64: 8, 128>}, {transform_indices = @transform_3, window_bounds = array<i64: 8, 128>}]} {
    %c0 = arith.constant 0 : index
    %c0_0 = arith.constant 0 : index
    %0 = vector.load %arg2[%c0, %c0_0] : memref<256x128xbf16, #tpu.memory_space<vmem>>, vector<256x128xbf16>
    %c0_1 = arith.constant 0 : index
    %c0_2 = arith.constant 0 : index
    %1 = vector.load %arg3[%c0_1, %c0_2] : memref<128x128xbf16, #tpu.memory_space<vmem>>, vector<128x128xbf16>
    %cst = arith.constant dense<0.000000e+00> : vector<256x128xf32>
    %2 = tpu.matmul %0, %1, %cst {dimension_numbers = #tpu.dot_dimension_numbers<[1], [0], [0], [1], [0, 0, 1, 1], [], []>} : vector<256x128xbf16>, vector<128x128xbf16>, vector<256x128xf32> -> vector<256x128xf32>
    %c0_i32 = arith.constant 0 : i32
    %3 = arith.cmpi eq, %arg1, %c0_i32 : i32
    %4 = arith.extui %3 : i1 to i32
    %c0_i32_3 = arith.constant 0 : i32
    %5 = arith.cmpi ne, %4, %c0_i32_3 : i32
    scf.if %5 {
      %cst_14 = arith.constant 0.000000e+00 : f32
      %16 = vector.broadcast %cst_14 : f32 to vector<8x128xf32>
      %c0_15 = arith.constant 0 : index
      %c0_16 = arith.constant 0 : index
      %17 = vector.load %arg4[%c0_15, %c0_16] : memref<8x128xf32, #tpu.memory_space<vmem>>, vector<8x128xf32>
      tpu.vector_store %arg4[%c0_15, %c0_16], %16 {strides = array<i32>} : memref<8x128xf32, #tpu.memory_space<vmem>>, vector<8x128xf32>,
      %cst_17 = arith.constant 0.000000e+00 : f32
      %18 = vector.broadcast %cst_17 : f32 to vector<8x128xf32>
      %c0_18 = arith.constant 0 : index
      %c0_19 = arith.constant 0 : index
      %19 = vector.load %arg5[%c0_18, %c0_19] : memref<8x128xf32, #tpu.memory_space<vmem>>, vector<8x128xf32>
      tpu.vector_store %arg5[%c0_18, %c0_19], %18 {strides = array<i32>} : memref<8x128xf32, #tpu.memory_space<vmem>>, vector<8x128xf32>,
    } else {
    }
    %6 = vector.shape_cast %2 : vector<256x128xf32> to vector<32x8x128xf32>
    %c0_4 = arith.constant 0 : index
    %c0_5 = arith.constant 0 : index
    %7 = vector.load %arg4[%c0_4, %c0_5] : memref<8x128xf32, #tpu.memory_space<vmem>>, vector<8x128xf32>
    %cst_6 = arith.constant dense<0.000000e+00> : vector<8x128xf32>
    %8 = vector.multi_reduction <add>, %6, %cst_6 [0] : vector<32x8x128xf32> to vector<8x128xf32>
    %9 = arith.addf %7, %8 : vector<8x128xf32>
    %c0_7 = arith.constant 0 : index
    %c0_8 = arith.constant 0 : index
    %10 = vector.load %arg4[%c0_7, %c0_8] : memref<8x128xf32, #tpu.memory_space<vmem>>, vector<8x128xf32>
    tpu.vector_store %arg4[%c0_7, %c0_8], %9 {strides = array<i32>} : memref<8x128xf32, #tpu.memory_space<vmem>>, vector<8x128xf32>,
    %c0_9 = arith.constant 0 : index
    %c0_10 = arith.constant 0 : index
    %11 = vector.load %arg5[%c0_9, %c0_10] : memref<8x128xf32, #tpu.memory_space<vmem>>, vector<8x128xf32>
    %12 = arith.mulf %6, %6 : vector<32x8x128xf32>
    %cst_11 = arith.constant dense<0.000000e+00> : vector<8x128xf32>
    %13 = vector.multi_reduction <add>, %12, %cst_11 [0] : vector<32x8x128xf32> to vector<8x128xf32>
    %14 = arith.addf %11, %13 : vector<8x128xf32>
    %c0_12 = arith.constant 0 : index
    %c0_13 = arith.constant 0 : index
    %15 = vector.load %arg5[%c0_12, %c0_13] : memref<8x128xf32, #tpu.memory_space<vmem>>, vector<8x128xf32>
    tpu.vector_store %arg5[%c0_12, %c0_13], %14 {strides = array<i32>} : memref<8x128xf32, #tpu.memory_space<vmem>>, vector<8x128xf32>,
    return
  }
  func.func @transform_0(%arg0: i32, %arg1: i32) -> (i32, i32) {
    %c1_i32 = arith.constant 1 : i32
    %0 = arith.muli %arg0, %c1_i32 : i32
    %1 = arith.addi %0, %arg1 : i32
    %c0_i32 = arith.constant 0 : i32
    %c0_i32_0 = arith.constant 0 : i32
    return %1, %c0_i32 : i32, i32
  }
  func.func @transform_1(%arg0: i32, %arg1: i32) -> (i32, i32) {
    %c0_i32 = arith.constant 0 : i32
    %c0_i32_0 = arith.constant 0 : i32
    %c0_i32_1 = arith.constant 0 : i32
    return %c0_i32, %c0_i32_0 : i32, i32
  }
  func.func @transform_2(%arg0: i32, %arg1: i32) -> (i32, i32) {
    %c0_i32 = arith.constant 0 : i32
    %c0_i32_0 = arith.constant 0 : i32
    return %arg0, %c0_i32 : i32, i32
  }
  func.func @transform_3(%arg0: i32, %arg1: i32) -> (i32, i32) {
    %c0_i32 = arith.constant 0 : i32
    %c0_i32_0 = arith.constant 0 : i32
    return %arg0, %c0_i32 : i32, i32
  }
}

module attributes {stable_mosaic.version = 11 : i64} {
  func.func @_mlp_fwd_from_x_kernel(%arg0: i32, %arg1: memref<256x128xbf16, #tpu.memory_space<vmem>>, %arg2: memref<128x128xbf16, #tpu.memory_space<vmem>>, %arg3: memref<2x128xf32, #tpu.memory_space<vmem>>, %arg4: memref<128x128xbf16, #tpu.memory_space<vmem>>, %arg5: memref<1x128xf32, #tpu.memory_space<vmem>>, %arg6: memref<256x128xf32, #tpu.memory_space<vmem>>) attributes {dimension_semantics = [#tpu.dimension_semantics<parallel>], iteration_bounds = array<i64: 1>, scalar_prefetch = 0 : i64, scratch_operands = 0 : i64, tpu.core_type = #tpu.core_type<tc>, window_params = [{transform_indices = @transform_0, window_bounds = array<i64: 256, 128>}, {pipeline_mode = #tpu.pipeline_mode<synchronous>, transform_indices = @transform_1, window_bounds = array<i64: 128, 128>}, {pipeline_mode = #tpu.pipeline_mode<synchronous>, transform_indices = @transform_2, window_bounds = array<i64: 2, 128>}, {pipeline_mode = #tpu.pipeline_mode<synchronous>, transform_indices = @transform_3, window_bounds = array<i64: 128, 128>}, {pipeline_mode = #tpu.pipeline_mode<synchronous>, transform_indices = @transform_4, window_bounds = array<i64: 1, 128>}, {transform_indices = @transform_5, window_bounds = array<i64: 256, 128>}]} {
    %c0 = arith.constant 0 : index
    %c0_0 = arith.constant 0 : index
    %0 = vector.load %arg1[%c0, %c0_0] : memref<256x128xbf16, #tpu.memory_space<vmem>>, vector<256x128xbf16>
    %c0_1 = arith.constant 0 : index
    %c0_2 = arith.constant 0 : index
    %1 = vector.load %arg2[%c0_1, %c0_2] : memref<128x128xbf16, #tpu.memory_space<vmem>>, vector<128x128xbf16>
    %cst = arith.constant dense<0.000000e+00> : vector<256x128xf32>
    %2 = tpu.matmul %0, %1, %cst {dimension_numbers = #tpu.dot_dimension_numbers<[1], [0], [0], [1], [0, 0, 1, 1], [], []>} : vector<256x128xbf16>, vector<128x128xbf16>, vector<256x128xf32> -> vector<256x128xf32>
    %c0_3 = arith.constant 0 : index
    %c0_4 = arith.constant 0 : index
    %3 = vector.load %arg3[%c0_3, %c0_4] : memref<2x128xf32, #tpu.memory_space<vmem>>, vector<2x128xf32>
    %4 = vector.extract_strided_slice %3 {offsets = [0, 0], sizes = [1, 128], strides = [1, 1]} : vector<2x128xf32> to vector<1x128xf32>
    %5 = vector.broadcast %4 : vector<1x128xf32> to vector<256x128xf32>
    %6 = arith.mulf %2, %5 : vector<256x128xf32>
    %7 = vector.extract_strided_slice %3 {offsets = [1, 0], sizes = [1, 128], strides = [1, 1]} : vector<2x128xf32> to vector<1x128xf32>
    %8 = vector.broadcast %7 : vector<1x128xf32> to vector<256x128xf32>
    %9 = arith.addf %6, %8 : vector<256x128xf32>
    %cst_5 = arith.constant 0.000000e+00 : f32
    %10 = vector.broadcast %cst_5 : f32 to vector<256x128xf32>
    %11 = arith.maximumf %9, %10 : vector<256x128xf32>
    %12 = arith.truncf %11 : vector<256x128xf32> to vector<256x128xbf16>
    %c0_6 = arith.constant 0 : index
    %c0_7 = arith.constant 0 : index
    %13 = vector.load %arg4[%c0_6, %c0_7] : memref<128x128xbf16, #tpu.memory_space<vmem>>, vector<128x128xbf16>
    %cst_8 = arith.constant dense<0.000000e+00> : vector<256x128xf32>
    %14 = tpu.matmul %12, %13, %cst_8 {dimension_numbers = #tpu.dot_dimension_numbers<[1], [0], [0], [1], [0, 0, 1, 1], [], []>} : vector<256x128xbf16>, vector<128x128xbf16>, vector<256x128xf32> -> vector<256x128xf32>
    %c0_9 = arith.constant 0 : index
    %c0_10 = arith.constant 0 : index
    %15 = vector.load %arg5[%c0_9, %c0_10] : memref<1x128xf32, #tpu.memory_space<vmem>>, vector<1x128xf32>
    %16 = vector.broadcast %15 : vector<1x128xf32> to vector<256x128xf32>
    %17 = arith.addf %14, %16 : vector<256x128xf32>
    %c0_11 = arith.constant 0 : index
    %c0_12 = arith.constant 0 : index
    %18 = vector.load %arg6[%c0_11, %c0_12] : memref<256x128xf32, #tpu.memory_space<vmem>>, vector<256x128xf32>
    tpu.vector_store %arg6[%c0_11, %c0_12], %17 {strides = array<i32>} : memref<256x128xf32, #tpu.memory_space<vmem>>, vector<256x128xf32>,
    return
  }
  func.func @transform_0(%arg0: i32) -> (i32, i32) {
    %c0_i32 = arith.constant 0 : i32
    %c0_i32_0 = arith.constant 0 : i32
    return %arg0, %c0_i32 : i32, i32
  }
  func.func @transform_1(%arg0: i32) -> (i32, i32) {
    %c0_i32 = arith.constant 0 : i32
    %c0_i32_0 = arith.constant 0 : i32
    %c0_i32_1 = arith.constant 0 : i32
    return %c0_i32, %c0_i32_0 : i32, i32
  }
  func.func @transform_2(%arg0: i32) -> (i32, i32) {
    %c0_i32 = arith.constant 0 : i32
    %c0_i32_0 = arith.constant 0 : i32
    %c0_i32_1 = arith.constant 0 : i32
    return %c0_i32, %c0_i32_0 : i32, i32
  }
  func.func @transform_3(%arg0: i32) -> (i32, i32) {
    %c0_i32 = arith.constant 0 : i32
    %c0_i32_0 = arith.constant 0 : i32
    %c0_i32_1 = arith.constant 0 : i32
    return %c0_i32, %c0_i32_0 : i32, i32
  }
  func.func @transform_4(%arg0: i32) -> (i32, i32) {
    %c0_i32 = arith.constant 0 : i32
    %c0_i32_0 = arith.constant 0 : i32
    %c0_i32_1 = arith.constant 0 : i32
    return %c0_i32, %c0_i32_0 : i32, i32
  }
  func.func @transform_5(%arg0: i32) -> (i32, i32) {
    %c0_i32 = arith.constant 0 : i32
    %c0_i32_0 = arith.constant 0 : i32
    return %arg0, %c0_i32 : i32, i32
  }
}

</mosaic_0001>

<bundles_post_ra>
// kernel: mlp_forward.2
= control target key start
LH: loop header
LB: loop body
LE: loop exit
PB: predicated region body
PF: predicated region fallthrough
CT: control target
= control target key end

     0   :  { %s794_s1 = inlined_call_operand.vmem [shape: bf16[128,128], index: 1, kind: input, shape index: {}]   ;;  %s795_s0 = inlined_call_operand.vmem [shape: bf16[256,128], index: 0, kind: input, shape index: {}]   ;;  %s796_s2 = inlined_call_operand.vmem [shape: f32[8,128], index: 2, kind: output, shape index: {0}]   ;;  %s797_s3 = inlined_call_operand.vmem [shape: f32[8,128], index: 3, kind: output, shape index: {1}]  }
   0x1   :  { %v622_v0 = vld [vmem:[%s794_s1] sm:$0xff]   ;;  %v623_v1 = vld [vmem:[%s794_s1 + $0x8] sm:$0xff]   ;;  %v624_v2 = vld [vmem:[%s794_s1 + $0x10] sm:$0xff]  }
   0x2   :  { %557 = vmatprep.subr.bf16.mxu0 %v622_v0  ;;  %605 = vmatprep.subr.bf16.mxu1 %v622_v0  ;;  %v625_v3 = vld [vmem:[%s794_s1 + $0x18] sm:$0xff]   ;;  %v630_v4 = vld [vmem:[%s795_s0] sm:$0xff]   ;;  %v627_v6 = vld [vmem:[%s794_s1 + $0x28] sm:$0xff]  }
   0x3   :  { %558 = vmatpush3.bf16.msra.mxu0 %v622_v0  ;;  %613 = vmatpush3.bf16.msra.mxu1 %v622_v0  ;;  %v626_v5 = vld [vmem:[%s794_s1 + $0x20] sm:$0xff]   ;;  %v628_v8 = vld [vmem:[%s794_s1 + $0x30] sm:$0xff]   ;;  %v629_v9 = vld [vmem:[%s794_s1 + $0x38] sm:$0xff]  }
   0x4   :  { %559 = vmatprep.subr.bf16.mxu0 %v623_v1  ;;  %606 = vmatprep.subr.bf16.mxu1 %v623_v1  ;;  %v638_v7 = vld [vmem:[%s795_s0 + $0x40] sm:$0xff]   ;;  %v631_v10 = vld [vmem:[%s795_s0 + $0x8] sm:$0xff]   ;;  %v632_v12 = vld [vmem:[%s795_s0 + $0x10] sm:$0xff]  }
   0x5   :  { %573 = vmatprep.mubr.bf16.mxu0 %v630_v4  ;;  %589 = vmatprep.mubr.bf16.mxu1 %v638_v7  ;;  %v639_v11 = vld [vmem:[%s795_s0 + $0x48] sm:$0xff]   ;;  %v640_v13 = vld [vmem:[%s795_s0 + $0x50] sm:$0xff]   ;;  %v633_v14 = vld [vmem:[%s795_s0 + $0x18] sm:$0xff]  }
   0x6   :  { %v641_v15 = vld [vmem:[%s795_s0 + $0x58] sm:$0xff]   ;;  %v634_v16 = vld [vmem:[%s795_s0 + $0x20] sm:$0xff]   ;;  %v635_v18 = vld [vmem:[%s795_s0 + $0x28] sm:$0xff]  }
   0x7   :  { %560 = vmatpush3.bf16.msra.mxu0 %v623_v1  ;;  %614 = vmatpush3.bf16.msra.mxu1 %v623_v1  ;;  %v642_v17 = vld [vmem:[%s795_s0 + $0x60] sm:$0xff]   ;;  %v643_v19 = vld [vmem:[%s795_s0 + $0x68] sm:$0xff]   ;;  %v636_v20 = vld [vmem:[%s795_s0 + $0x30] sm:$0xff]  }
   0x8   :  { %561 = vmatprep.subr.bf16.mxu0 %v624_v2  ;;  %607 = vmatprep.subr.bf16.mxu1 %v624_v2  ;;  %v644_v21 = vld [vmem:[%s795_s0 + $0x70] sm:$0xff]   ;;  %v637_v22 = vld [vmem:[%s795_s0 + $0x38] sm:$0xff]  }
   0x9   :  { %v645_v23 = vld [vmem:[%s795_s0 + $0x78] sm:$0xff]  }
   0xb   :  { %562 = vmatpush3.bf16.msra.mxu0 %v624_v2  ;;  %615 = vmatpush3.bf16.msra.mxu1 %v624_v2 }
   0xc   :  { %563 = vmatprep.subr.bf16.mxu0 %v625_v3  ;;  %608 = vmatprep.subr.bf16.mxu1 %v625_v3 }
   0xf   :  { %564 = vmatpush3.bf16.msra.mxu0 %v625_v3  ;;  %616 = vmatpush3.bf16.msra.mxu1 %v625_v3 }
  0x10   :  { %565 = vmatprep.subr.bf16.mxu0 %v626_v5  ;;  %609 = vmatprep.subr.bf16.mxu1 %v626_v5 }
  0x13   :  { %566 = vmatpush3.bf16.msra.mxu0 %v626_v5  ;;  %617 = vmatpush3.bf16.msra.mxu1 %v626_v5 }
  0x14   :  { %567 = vmatprep.subr.bf16.mxu0 %v627_v6  ;;  %610 = vmatprep.subr.bf16.mxu1 %v627_v6 }
  0x17   :  { %568 = vmatpush3.bf16.msra.mxu0 %v627_v6  ;;  %618 = vmatpush3.bf16.msra.mxu1 %v627_v6 }
  0x18   :  { %569 = vmatprep.subr.bf16.mxu0 %v628_v8  ;;  %611 = vmatprep.subr.bf16.mxu1 %v628_v8 }
  0x1b   :  { %570 = vmatpush3.bf16.msra.mxu0 %v628_v8  ;;  %619 = vmatpush3.bf16.msra.mxu1 %v628_v8 }
  0x1c   :  { %571 = vmatprep.subr.bf16.mxu0 %v629_v9  ;;  %612 = vmatprep.subr.bf16.mxu1 %v629_v9 }
  0x1f   :  { %572 = vmatpush3.bf16.msra.mxu0 %v629_v9  ;;  %620 = vmatpush3.bf16.msra.mxu1 %v629_v9 }
  0x22   :  { %574 = vmatmul.mubr.bf16.vlgmr.msra.gmra.mrb[0].mxu0 %v631_v10  ;;  %590 = vmatmul.mubr.bf16.vlgmr.msra.gmra.mrb[0].mxu1 %v639_v11 }
  0x23   :  { %577 = vmatprep.mubr.bf16.mxu0 %v632_v12  ;;  %593 = vmatprep.mubr.bf16.mxu1 %v640_v13 }
  0x2a   :  { %578 = vmatmul.mubr.bf16.gmra.mrb[4].mxu0 %v633_v14  ;;  %594 = vmatmul.mubr.bf16.gmra.mrb[4].mxu1 %v641_v15 }
  0x2b   :  { %581 = vmatprep.mubr.bf16.mxu0 %v634_v16  ;;  %597 = vmatprep.mubr.bf16.mxu1 %v642_v17 }
  0x32   :  { %582 = vmatmul.mubr.bf16.gmra.mrb[8].mxu0 %v635_v18  ;;  %598 = vmatmul.mubr.bf16.gmra.mrb[8].mxu1 %v643_v19 }
  0x33   :  { %585 = vmatprep.mubr.bf16.mxu0 %v636_v20  ;;  %601 = vmatprep.mubr.bf16.mxu1 %v644_v21 }
  0x3a   :  { %586 = vmatmul.mubr.bf16.gmra.mrb[12].mxu0 %v637_v22  ;;  %602 = vmatmul.mubr.bf16.gmra.mrb[12].mxu1 %v645_v23 }
  0xf5   :  { %v575_v24 = vpop.f32.mrb[0].mxu0  ;;  %v738_v25 = vpop.f32.mrb[0].mxu1 }
  0xf6   :  { %v262_v26 = vpop.f32.mrb[1].mxu0  ;;  %v740_v27 = vpop.f32.mrb[1].mxu1  ;;  %v432_v35 = vmul.f32 %v575_v24, %v575_v24 }
  0xf7   :  { %v576_v28 = vpop.f32.mrb[2].mxu0  ;;  %v742_v29 = vpop.f32.mrb[2].mxu1  ;;  %v430_v32 = vmul.f32 %v262_v26, %v262_v26 }
  0xf8   :  { %v265_v30 = vpop.f32.mrb[3].mxu0  ;;  %v744_v31 = vpop.f32.mrb[3].mxu1  ;;  %v433_v38 = vmul.f32 %v576_v28, %v576_v28 }
  0xf9   :  { %v396_v33 = vadd.f32 %v265_v30, %v262_v26  ;;  %v431_v34 = vmul.f32 %v265_v30, %v265_v30 }
  0xfb   :  { %v397_v36 = vadd.f32 %v575_v24, %v396_v33  ;;  %v462_v37 = vadd.f32 %v431_v34, %v430_v32 }
  0xfd   :  { %v463_v39 = vadd.f32 %v462_v37, %v432_v35  ;;  %v579_v40 = vpop.f32.mrb[4].mxu0  ;;  %v398_v41 = vadd.f32 %v576_v28, %v397_v36  ;;  %v746_v42 = vpop.f32.mrb[4].mxu1 }
  0xfe   :  { %v278_v43 = vpop.f32.mrb[5].mxu0  ;;  %v748_v44 = vpop.f32.mrb[5].mxu1  ;;  %v436_v55 = vmul.f32 %v579_v40, %v579_v40 }
  0xff   :  { %v399_v45 = vadd.f32 %v398_v41, %v278_v43  ;;  %v434_v46 = vmul.f32 %v278_v43, %v278_v43  ;;  %v464_v47 = vadd.f32 %v463_v39, %v433_v38  ;;  %v580_v48 = vpop.f32.mrb[6].mxu0  ;;  %v750_v49 = vpop.f32.mrb[6].mxu1  ;;  %v446_v41 = vmul.f32 %v740_v27, %v740_v27 }
 0x100   :  { %v281_v50 = vpop.f32.mrb[7].mxu0  ;;  %v752_v51 = vpop.f32.mrb[7].mxu1  ;;  %v437_v58 = vmul.f32 %v580_v48, %v580_v48 }
 0x101   :  { %v465_v52 = vadd.f32 %v464_v47, %v434_v46  ;;  %v400_v53 = vadd.f32 %v399_v45, %v281_v50  ;;  %v435_v54 = vmul.f32 %v281_v50, %v281_v50  ;;  %v448_v50 = vmul.f32 %v738_v25, %v738_v25 }
 0x103   :  { %v401_v56 = vadd.f32 %v579_v40, %v400_v53  ;;  %v466_v57 = vadd.f32 %v465_v52, %v435_v54  ;;  %v449_v54 = vmul.f32 %v742_v29, %v742_v29 }
 0x105   :  { %v467_v59 = vadd.f32 %v466_v57, %v436_v55  ;;  %v583_v60 = vpop.f32.mrb[8].mxu0  ;;  %v402_v61 = vadd.f32 %v580_v48, %v401_v56  ;;  %v754_v62 = vpop.f32.mrb[8].mxu1  ;;  %v447_v48 = vmul.f32 %v744_v31, %v744_v31 }
 0x106   :  { %v294_v63 = vpop.f32.mrb[9].mxu0  ;;  %v358_v0 = vpop.f32.mrb[9].mxu1  ;;  %v440_v11 = vmul.f32 %v583_v60, %v583_v60 }
 0x107   :  { %v403_v1 = vadd.f32 %v402_v61, %v294_v63  ;;  %v438_v2 = vmul.f32 %v294_v63, %v294_v63  ;;  %v468_v3 = vadd.f32 %v467_v59, %v437_v58  ;;  %v584_v4 = vpop.f32.mrb[10].mxu0  ;;  %v756_v5 = vpop.f32.mrb[10].mxu1 }
 0x108   :  { %v297_v6 = vpop.f32.mrb[11].mxu0  ;;  %v361_v7 = vpop.f32.mrb[11].mxu1  ;;  %v441_v14 = vmul.f32 %v584_v4, %v584_v4 }
 0x109   :  { %v469_v8 = vadd.f32 %v468_v3, %v438_v2  ;;  %v404_v9 = vadd.f32 %v403_v1, %v297_v6  ;;  %v439_v10 = vmul.f32 %v297_v6, %v297_v6 }
 0x10b   :  { %v405_v12 = vadd.f32 %v583_v60, %v404_v9  ;;  %v470_v13 = vadd.f32 %v469_v8, %v439_v10  ;;  %v451_v60 = vmul.f32 %v752_v51, %v752_v51  ;;  %v455_v9 = vmul.f32 %v361_v7, %v361_v7 }
 0x10d   :  { %v471_v15 = vadd.f32 %v470_v13, %v440_v11  ;;  %v587_v16 = vpop.f32.mrb[12].mxu0  ;;  %v406_v17 = vadd.f32 %v584_v4, %v405_v12  ;;  %v603_v18 = vpop.f32.mrb[12].mxu1 }
 0x10e   :  { %v310_v19 = vpop.f32.mrb[13].mxu0  ;;  %v374_v20 = vpop.f32.mrb[13].mxu1  ;;  %v444_v35 = vmul.f32 %v587_v16, %v587_v16 }
 0x10f   :  { %v407_v21 = vadd.f32 %v406_v17, %v310_v19  ;;  %v442_v22 = vmul.f32 %v310_v19, %v310_v19  ;;  %v472_v23 = vadd.f32 %v471_v15, %v441_v14  ;;  %v588_v24 = vpop.f32.mrb[14].mxu0  ;;  %v604_v26 = vpop.f32.mrb[14].mxu1  ;;  %v458_v14 = vmul.f32 %v374_v20, %v374_v20 }
 0x110   :  { %v313_v28 = vpop.f32.mrb[15].mxu0  ;;  %v377_v30 = vpop.f32.mrb[15].mxu1  ;;  %v445_v38 = vmul.f32 %v588_v24, %v588_v24  ;;  %v460_v19 = vmul.f32 %v603_v18, %v603_v18 }
 0x111   :  { %v473_v32 = vadd.f32 %v472_v23, %v442_v22  ;;  %v408_v33 = vadd.f32 %v407_v21, %v313_v28  ;;  %v443_v34 = vmul.f32 %v313_v28, %v313_v28  ;;  %v459_v17 = vmul.f32 %v377_v30, %v377_v30 }
 0x112   :  { %v461_v22 = vmul.f32 %v604_v26, %v604_v26 }
 0x113   :  { %v409_v36 = vadd.f32 %v587_v16, %v408_v33  ;;  %v474_v37 = vadd.f32 %v473_v32, %v443_v34 }
 0x115   :  { %v475_v39 = vadd.f32 %v474_v37, %v444_v35  ;;  %v410_v40 = vadd.f32 %v588_v24, %v409_v36 }
 0x117   :  { %v411_v43 = vadd.f32 %v410_v40, %v740_v27  ;;  %v476_v45 = vadd.f32 %v475_v39, %v445_v38  ;;  %v450_v27 = vmul.f32 %v748_v44, %v748_v44 }
 0x119   :  { %v477_v46 = vadd.f32 %v476_v45, %v446_v41  ;;  %v412_v47 = vadd.f32 %v411_v43, %v744_v31 }
 0x11b   :  { %v413_v52 = vadd.f32 %v738_v25, %v412_v47  ;;  %v478_v53 = vadd.f32 %v477_v46, %v447_v48  ;;  %v452_v25 = vmul.f32 %v746_v42, %v746_v42 }
 0x11d   :  { %v479_v55 = vadd.f32 %v478_v53, %v448_v50  ;;  %v414_v56 = vadd.f32 %v742_v29, %v413_v52  ;;  %v453_v29 = vmul.f32 %v750_v49, %v750_v49 }
 0x11f   :  { %v415_v57 = vadd.f32 %v414_v56, %v748_v44  ;;  %v480_v58 = vadd.f32 %v479_v55, %v449_v54  ;;  %v454_v44 = vmul.f32 %v358_v0, %v358_v0 }
 0x121   :  { %v481_v59 = vadd.f32 %v480_v58, %v450_v27  ;;  %v416_v31 = vadd.f32 %v415_v57, %v752_v51  ;;  %v456_v51 = vmul.f32 %v754_v62, %v754_v62 }
 0x123   :  { %v417_v61 = vadd.f32 %v746_v42, %v416_v31  ;;  %v482_v63 = vadd.f32 %v481_v59, %v451_v60  ;;  %v457_v42 = vmul.f32 %v756_v5, %v756_v5 }
 0x125   :  { %v483_v1 = vadd.f32 %v482_v63, %v452_v25  ;;  %v418_v2 = vadd.f32 %v750_v49, %v417_v61 }
 0x127   :  { %v419_v3 = vadd.f32 %v418_v2, %v358_v0  ;;  %v484_v4 = vadd.f32 %v483_v1, %v453_v29 }
 0x129   :  { %v485_v6 = vadd.f32 %v484_v4, %v454_v44  ;;  %v420_v8 = vadd.f32 %v419_v3, %v361_v7 }
 0x12b   :  { %v421_v10 = vadd.f32 %v754_v62, %v420_v8  ;;  %v486_v11 = vadd.f32 %v485_v6, %v455_v9 }
 0x12d   :  { %v487_v12 = vadd.f32 %v486_v11, %v456_v51  ;;  %v422_v13 = vadd.f32 %v756_v5, %v421_v10 }
 0x12f   :  { %v423_v49 = vadd.f32 %v422_v13, %v374_v20  ;;  %v488_v15 = vadd.f32 %v487_v12, %v457_v42 }
 0x131   :  { %v489_v0 = vadd.f32 %v488_v15, %v458_v14  ;;  %v424_v16 = vadd.f32 %v423_v49, %v377_v30 }
 0x133   :  { %v425_v7 = vadd.f32 %v603_v18, %v424_v16  ;;  %v490_v21 = vadd.f32 %v489_v0, %v459_v17 }
 0x135   :  { %v426_v23 = vadd.f32 %v604_v26, %v425_v7  ;;  %v491_v24 = vadd.f32 %v490_v21, %v460_v19 }
 0x137   :  { %v492_v62 = vadd.f32 %v491_v24, %v461_v22  ;;  %428 = vst [vmem:[%s796_s2] sm:$0xff] %v426_v23 }
 0x139   :  { %494 = vst [vmem:[%s797_s3] sm:$0xff] %v492_v62 }

// kernel: mlp_forward.3
= control target key start
LH: loop header
LB: loop body
LE: loop exit
PB: predicated region body
PF: predicated region fallthrough
CT: control target
= control target key end

     0   :  { %v375_v32 = vlaneseq  ;;  %s1302_s1 = inlined_call_operand.vmem [shape: bf16[128,128], index: 1, kind: input, shape index: {}]   ;;  %s1303_s0 = inlined_call_operand.vmem [shape: bf16[256,128], index: 0, kind: input, shape index: {}]   ;;  %s1304_s3 = inlined_call_operand.vmem [shape: bf16[128,128], index: 3, kind: input, shape index: {}]   ;;  %s1305_s2 = inlined_call_operand.vmem [shape: f32[2,128], index: 2, kind: input, shape index: {}]   ;;  %s1306_s4 = inlined_call_operand.vmem [shape: f32[1,128], index: 4, kind: input, shape index: {}]   ;;  %s1307_s5 = inlined_call_operand.vmem [shape: f32[256,128], index: 5, kind: output, shape index: {}]  }
   0x1   :  { %v940_v0 = vld [vmem:[%s1302_s1] sm:$0xff]   ;;  %v941_v1 = vld [vmem:[%s1302_s1 + $0x8] sm:$0xff]   ;;  %v942_v2 = vld [vmem:[%s1302_s1 + $0x10] sm:$0xff]  }
   0x2   :  { %844 = vmatprep.subr.bf16.mxu0 %v940_v0  ;;  %v943_v3 = vld [vmem:[%s1302_s1 + $0x18] sm:$0xff]   ;;  %v948_v4 = vld [vmem:[%s1303_s0] sm:$0xff]   ;;  %v945_v6 = vld [vmem:[%s1302_s1 + $0x28] sm:$0xff]   ;;  %v376_v33 = vshrl.u32 %v375_v32, 7 }
   0x3   :  { %845 = vmatpush3.bf16.msra.mxu0 %v940_v0  ;;  %860 = vmatprep.mubr.bf16.mxu0 %v948_v4  ;;  %v944_v5 = vld [vmem:[%s1302_s1 + $0x20] sm:$0xff]   ;;  %v946_v7 = vld [vmem:[%s1302_s1 + $0x30] sm:$0xff]   ;;  %v947_v8 = vld [vmem:[%s1302_s1 + $0x38] sm:$0xff]  }
   0x4   :  { %846 = vmatprep.subr.bf16.mxu0 %v941_v1  ;;  %v964_v9 = vld [vmem:[%s1304_s3] sm:$0xff]   ;;  %v965_v10 = vld [vmem:[%s1304_s3 + $0x8] sm:$0xff]   ;;  %v966_v12 = vld [vmem:[%s1304_s3 + $0x10] sm:$0xff]   ;;  %v377_v34 = vsub.s32 0, %v376_v33  ;;  %v413_v36 = vsub.s32 1, %v376_v33 }
   0x5   :  { %892 = vmatprep.subr.bf16.mxu1 %v964_v9  ;;  %v949_v11 = vld [vmem:[%s1303_s0 + $0x8] sm:$0xff]   ;;  %v950_v13 = vld [vmem:[%s1303_s0 + $0x10] sm:$0xff]   ;;  %v967_v14 = vld [vmem:[%s1304_s3 + $0x18] sm:$0xff]  }
   0x6   :  { %893 = vmatpush3.bf16.msra.mxu1 %v964_v9  ;;  %v968_v15 = vld [vmem:[%s1304_s3 + $0x20] sm:$0xff]   ;;  %v951_v16 = vld [vmem:[%s1303_s0 + $0x18] sm:$0xff]   ;;  %v953_v18 = vld [vmem:[%s1303_s0 + $0x28] sm:$0xff]  }
   0x7   :  { %847 = vmatpush3.bf16.msra.mxu0 %v941_v1  ;;  %894 = vmatprep.subr.bf16.mxu1 %v965_v10  ;;  %v952_v17 = vld [vmem:[%s1303_s0 + $0x20] sm:$0xff]   ;;  %v954_v19 = vld [vmem:[%s1303_s0 + $0x30] sm:$0xff]   ;;  %v955_v20 = vld [vmem:[%s1303_s0 + $0x38] sm:$0xff]  }
   0x8   :  { %848 = vmatprep.subr.bf16.mxu0 %v942_v2  ;;  %v956_v21 = vld [vmem:[%s1303_s0 + $0x40] sm:$0xff]   ;;  %v957_v22 = vld [vmem:[%s1303_s0 + $0x48] sm:$0xff]   ;;  %v958_v23 = vld [vmem:[%s1303_s0 + $0x50] sm:$0xff]  }
   0x9   :  { %v959_v24 = vld [vmem:[%s1303_s0 + $0x58] sm:$0xff]   ;;  %v960_v25 = vld [vmem:[%s1303_s0 + $0x60] sm:$0xff]   ;;  %v961_v26 = vld [vmem:[%s1303_s0 + $0x68] sm:$0xff]  }
   0xa   :  { %895 = vmatpush3.bf16.msra.mxu1 %v965_v10  ;;  %v962_v27 = vld [vmem:[%s1303_s0 + $0x70] sm:$0xff]   ;;  %v963_v28 = vld [vmem:[%s1303_s0 + $0x78] sm:$0xff]   ;;  %v969_v29 = vld [vmem:[%s1304_s3 + $0x28] sm:$0xff]  }
   0xb   :  { %849 = vmatpush3.bf16.msra.mxu0 %v942_v2  ;;  %896 = vmatprep.subr.bf16.mxu1 %v966_v12  ;;  %v970_v30 = vld [vmem:[%s1304_s3 + $0x30] sm:$0xff]   ;;  %v971_v31 = vld [vmem:[%s1304_s3 + $0x38] sm:$0xff]   ;;  %v374_v35 = vld [vmem:[%s1305_s2] sm:$0x3] }
   0xc   :  { %850 = vmatprep.subr.bf16.mxu0 %v943_v3  ;;  %v1101_v37 = vrot.slane %v374_v35, %v377_v34  ;;  %v1103_v38 = vrot.slane %v374_v35, %v413_v36 }
   0xe   :  { %897 = vmatpush3.bf16.msra.mxu1 %v966_v12 }
   0xf   :  { %851 = vmatpush3.bf16.msra.mxu0 %v943_v3  ;;  %898 = vmatprep.subr.bf16.mxu1 %v967_v14 }
  0x10   :  { %852 = vmatprep.subr.bf16.mxu0 %v944_v5 }
  0x12   :  { %899 = vmatpush3.bf16.msra.mxu1 %v967_v14 }
  0x13   :  { %853 = vmatpush3.bf16.msra.mxu0 %v944_v5  ;;  %900 = vmatprep.subr.bf16.mxu1 %v968_v15 }
  0x14   :  { %854 = vmatprep.subr.bf16.mxu0 %v945_v6 }
  0x16   :  { %901 = vmatpush3.bf16.msra.mxu1 %v968_v15 }
  0x17   :  { %855 = vmatpush3.bf16.msra.mxu0 %v945_v6  ;;  %902 = vmatprep.subr.bf16.mxu1 %v969_v29 }
  0x18   :  { %856 = vmatprep.subr.bf16.mxu0 %v946_v7 }
  0x1a   :  { %903 = vmatpush3.bf16.msra.mxu1 %v969_v29 }
  0x1b   :  { %857 = vmatpush3.bf16.msra.mxu0 %v946_v7  ;;  %904 = vmatprep.subr.bf16.mxu1 %v970_v30 }
  0x1c   :  { %858 = vmatprep.subr.bf16.mxu0 %v947_v8 }
  0x1e   :  { %905 = vmatpush3.bf16.msra.mxu1 %v970_v30 }
  0x1f   :  { %859 = vmatpush3.bf16.msra.mxu0 %v947_v8  ;;  %906 = vmatprep.subr.bf16.mxu1 %v971_v31 }
  0x22   :  { %861 = vmatmul.mubr.bf16.vlgmr.msra.gmra.mrb[0].mxu0 %v949_v11  ;;  %907 = vmatpush3.bf16.msra.mxu1 %v971_v31 }
  0x23   :  { %864 = vmatprep.mubr.bf16.mxu0 %v950_v13 }
  0x2a   :  { %865 = vmatmul.mubr.bf16.gmra.mrb[4].mxu0 %v951_v16 }
  0x2b   :  { %868 = vmatprep.mubr.bf16.mxu0 %v952_v17 }
  0x32   :  { %869 = vmatmul.mubr.bf16.gmra.mrb[8].mxu0 %v953_v18 }
  0x33   :  { %872 = vmatprep.mubr.bf16.mxu0 %v954_v19 }
  0x3a   :  { %873 = vmatmul.mubr.bf16.gmra.mrb[12].mxu0 %v955_v20 }
  0x3b   :  { %876 = vmatprep.mubr.bf16.mxu0 %v956_v21 }
  0x42   :  { %877 = vmatmul.mubr.bf16.gmra.mrb[16].mxu0 %v957_v22 }
  0x43   :  { %880 = vmatprep.mubr.bf16.mxu0 %v958_v23 }
  0x4a   :  { %881 = vmatmul.mubr.bf16.gmra.mrb[20].mxu0 %v959_v24 }
  0x4b   :  { %884 = vmatprep.mubr.bf16.mxu0 %v960_v25 }
  0x52   :  { %885 = vmatmul.mubr.bf16.gmra.mrb[24].mxu0 %v961_v26 }
  0x53   :  { %888 = vmatprep.mubr.bf16.mxu0 %v962_v27 }
  0x5a   :  { %889 = vmatmul.mubr.bf16.gmra.mrb[28].mxu0 %v963_v28 }
  0xf5   :  { %v862_v39 = vpop.f32.mrb[0].mxu0 }
  0xf6   :  { %v381_v40 = vmul.f32 %v862_v39, %v1101_v37  ;;  %v247_v41 = vpop.f32.mrb[1].mxu0 }
  0xf7   :  { %v379_v42 = vmul.f32 %v1101_v37, %v247_v41  ;;  %v863_v43 = vpop.f32.mrb[2].mxu0 }
  0xf8   :  { %v417_v44 = vadd.f32 %v1103_v38, %v381_v40  ;;  %v382_v45 = vmul.f32 %v863_v43, %v1101_v37  ;;  %v250_v46 = vpop.f32.mrb[3].mxu0 }
  0xf9   :  { %v380_v47 = vmul.f32 %v1101_v37, %v250_v46  ;;  %v415_v48 = vadd.f32 %v1103_v38, %v379_v42 }
  0xfa   :  { %v418_v49 = vadd.f32 %v1103_v38, %v382_v45  ;;  %v449_v51 = vmax.f32 %v417_v44, 0.0 }
  0xfb   :  { %v416_v50 = vadd.f32 %v1103_v38, %v380_v47  ;;  %v447_v54 = vmax.f32 %v415_v48, 0.0 }
  0xfc   :  { %v450_v52 = vmax.f32 %v418_v49, 0.0 }
  0xfd   :  { %v866_v53 = vpop.f32.mrb[4].mxu0  ;;  %v448_v55 = vmax.f32 %v416_v50, 0.0 }
  0xfe   :  { %v385_v56 = vmul.f32 %v866_v53, %v1101_v37  ;;  %v263_v57 = vpop.f32.mrb[5].mxu0  ;;  %v480_v58 = vpack.c.bf16 %v450_v52, %v449_v51 }
  0xff   :  { %v383_v59 = vmul.f32 %v1101_v37, %v263_v57  ;;  %v867_v60 = vpop.f32.mrb[6].mxu0  ;;  %v479_v61 = vpack.c.bf16 %v448_v55, %v447_v54 }
 0x100   :  { %v421_v62 = vadd.f32 %v1103_v38, %v385_v56  ;;  %v386_v63 = vmul.f32 %v867_v60, %v1101_v37  ;;  %v266_v0 = vpop.f32.mrb[7].mxu0 }
 0x101   :  { %v419_v1 = vadd.f32 %v1103_v38, %v383_v59  ;;  %v384_v2 = vmul.f32 %v1101_v37, %v266_v0  ;;  %908 = vmatprep.mubr.bf16.mxu1 %v479_v61 }
 0x102   :  { %v422_v3 = vadd.f32 %v1103_v38, %v386_v63  ;;  %909 = vmatmul.mubr.bf16.vlgmr.msra.gmra.mrb[0].mxu1 %v480_v58  ;;  %v453_v5 = vmax.f32 %v421_v62, 0.0 }
 0x103   :  { %v420_v4 = vadd.f32 %v1103_v38, %v384_v2  ;;  %v451_v7 = vmax.f32 %v419_v1, 0.0 }
 0x104   :  { %v454_v6 = vmax.f32 %v422_v3, 0.0 }
 0x105   :  { %v452_v8 = vmax.f32 %v420_v4, 0.0  ;;  %v870_v9 = vpop.f32.mrb[8].mxu0 }
 0x106   :  { %v389_v10 = vmul.f32 %v870_v9, %v1101_v37  ;;  %v279_v11 = vpop.f32.mrb[9].mxu0  ;;  %v482_v12 = vpack.c.bf16 %v454_v6, %v453_v5 }
 0x107   :  { %v387_v13 = vmul.f32 %v1101_v37, %v279_v11  ;;  %v871_v14 = vpop.f32.mrb[10].mxu0  ;;  %v481_v15 = vpack.c.bf16 %v452_v8, %v451_v7 }
 0x108   :  { %v425_v16 = vadd.f32 %v1103_v38, %v389_v10  ;;  %v390_v17 = vmul.f32 %v871_v14, %v1101_v37  ;;  %v282_v18 = vpop.f32.mrb[11].mxu0 }
 0x109   :  { %v423_v19 = vadd.f32 %v1103_v38, %v387_v13  ;;  %v388_v20 = vmul.f32 %v1101_v37, %v282_v18  ;;  %912 = vmatprep.mubr.bf16.mxu1 %v481_v15 }
 0x10a   :  { %v426_v21 = vadd.f32 %v1103_v38, %v390_v17  ;;  %913 = vmatmul.mubr.bf16.gmra.mrb[4].mxu1 %v482_v12  ;;  %v457_v23 = vmax.f32 %v425_v16, 0.0 }
 0x10b   :  { %v424_v22 = vadd.f32 %v1103_v38, %v388_v20  ;;  %v455_v25 = vmax.f32 %v423_v19, 0.0 }
 0x10c   :  { %v458_v24 = vmax.f32 %v426_v21, 0.0 }
 0x10d   :  { %v456_v26 = vmax.f32 %v424_v22, 0.0  ;;  %v874_v27 = vpop.f32.mrb[12].mxu0 }
 0x10e   :  { %v393_v28 = vmul.f32 %v874_v27, %v1101_v37  ;;  %v295_v29 = vpop.f32.mrb[13].mxu0  ;;  %v484_v30 = vpack.c.bf16 %v458_v24, %v457_v23 }
 0x10f   :  { %v391_v31 = vmul.f32 %v1101_v37, %v295_v29  ;;  %v875_v32 = vpop.f32.mrb[14].mxu0  ;;  %v483_v33 = vpack.c.bf16 %v456_v26, %v455_v25 }
 0x110   :  { %v429_v34 = vadd.f32 %v1103_v38, %v393_v28  ;;  %v394_v35 = vmul.f32 %v875_v32, %v1101_v37  ;;  %v298_v36 = vpop.f32.mrb[15].mxu0 }
 0x111   :  { %v427_v39 = vadd.f32 %v1103_v38, %v391_v31  ;;  %v392_v40 = vmul.f32 %v1101_v37, %v298_v36  ;;  %916 = vmatprep.mubr.bf16.mxu1 %v483_v33 }
 0x112   :  { %v430_v41 = vadd.f32 %v1103_v38, %v394_v35  ;;  %917 = vmatmul.mubr.bf16.gmra.mrb[8].mxu1 %v484_v30  ;;  %v461_v43 = vmax.f32 %v429_v34, 0.0 }
 0x113   :  { %v428_v42 = vadd.f32 %v1103_v38, %v392_v40  ;;  %v459_v45 = vmax.f32 %v427_v39, 0.0 }
 0x114   :  { %v462_v44 = vmax.f32 %v430_v41, 0.0 }
 0x115   :  { %v460_v46 = vmax.f32 %v428_v42, 0.0  ;;  %v878_v47 = vpop.f32.mrb[16].mxu0 }
 0x116   :  { %v397_v48 = vmul.f32 %v878_v47, %v1101_v37  ;;  %v311_v49 = vpop.f32.mrb[17].mxu0  ;;  %v486_v50 = vpack.c.bf16 %v462_v44, %v461_v43 }
 0x117   :  { %v395_v51 = vmul.f32 %v1101_v37, %v311_v49  ;;  %v879_v52 = vpop.f32.mrb[18].mxu0  ;;  %v485_v53 = vpack.c.bf16 %v460_v46, %v459_v45 }
 0x118   :  { %v433_v54 = vadd.f32 %v1103_v38, %v397_v48  ;;  %v398_v55 = vmul.f32 %v879_v52, %v1101_v37  ;;  %v314_v56 = vpop.f32.mrb[19].mxu0 }
 0x119   :  { %v431_v57 = vadd.f32 %v1103_v38, %v395_v51  ;;  %v396_v58 = vmul.f32 %v1101_v37, %v314_v56  ;;  %920 = vmatprep.mubr.bf16.mxu1 %v485_v53 }
 0x11a   :  { %v434_v59 = vadd.f32 %v1103_v38, %v398_v55  ;;  %921 = vmatmul.mubr.bf16.gmra.mrb[12].mxu1 %v486_v50  ;;  %v465_v61 = vmax.f32 %v433_v54, 0.0 }
 0x11b   :  { %v432_v60 = vadd.f32 %v1103_v38, %v396_v58  ;;  %v463_v63 = vmax.f32 %v431_v57, 0.0 }
 0x11c   :  { %v466_v62 = vmax.f32 %v434_v59, 0.0  ;;  %v1172_v59 = vld [vmem:[%s1306_s4] ss:$0 sm:$0xff] }
 0x11d   :  { %v464_v0 = vmax.f32 %v432_v60, 0.0  ;;  %v882_v1 = vpop.f32.mrb[20].mxu0 }
 0x11e   :  { %v401_v2 = vmul.f32 %v882_v1, %v1101_v37  ;;  %v327_v3 = vpop.f32.mrb[21].mxu0  ;;  %v488_v4 = vpack.c.bf16 %v466_v62, %v465_v61 }
 0x11f   :  { %v399_v5 = vmul.f32 %v1101_v37, %v327_v3  ;;  %v883_v6 = vpop.f32.mrb[22].mxu0  ;;  %v487_v7 = vpack.c.bf16 %v464_v0, %v463_v63 }
 0x120   :  { %v437_v8 = vadd.f32 %v1103_v38, %v401_v2  ;;  %v402_v9 = vmul.f32 %v883_v6, %v1101_v37  ;;  %v330_v10 = vpop.f32.mrb[23].mxu0 }
 0x121   :  { %v435_v11 = vadd.f32 %v1103_v38, %v399_v5  ;;  %v400_v12 = vmul.f32 %v1101_v37, %v330_v10  ;;  %924 = vmatprep.mubr.bf16.mxu1 %v487_v7 }
 0x122   :  { %v438_v13 = vadd.f32 %v1103_v38, %v402_v9  ;;  %925 = vmatmul.mubr.bf16.gmra.mrb[16].mxu1 %v488_v4  ;;  %v469_v15 = vmax.f32 %v437_v8, 0.0 }
 0x123   :  { %v436_v14 = vadd.f32 %v1103_v38, %v400_v12  ;;  %v467_v17 = vmax.f32 %v435_v11, 0.0 }
 0x124   :  { %v470_v16 = vmax.f32 %v438_v13, 0.0 }
 0x125   :  { %v468_v18 = vmax.f32 %v436_v14, 0.0  ;;  %v886_v19 = vpop.f32.mrb[24].mxu0 }
 0x126   :  { %v405_v20 = vmul.f32 %v886_v19, %v1101_v37  ;;  %v343_v21 = vpop.f32.mrb[25].mxu0  ;;  %v490_v22 = vpack.c.bf16 %v470_v16, %v469_v15 }
 0x127   :  { %v403_v23 = vmul.f32 %v1101_v37, %v343_v21  ;;  %v887_v24 = vpop.f32.mrb[26].mxu0  ;;  %v489_v25 = vpack.c.bf16 %v468_v18, %v467_v17 }
 0x128   :  { %v441_v26 = vadd.f32 %v1103_v38, %v405_v20  ;;  %v406_v27 = vmul.f32 %v887_v24, %v1101_v37  ;;  %v346_v28 = vpop.f32.mrb[27].mxu0 }
 0x129   :  { %v439_v29 = vadd.f32 %v1103_v38, %v403_v23  ;;  %v404_v30 = vmul.f32 %v1101_v37, %v346_v28  ;;  %928 = vmatprep.mubr.bf16.mxu1 %v489_v25 }
 0x12a   :  { %v442_v31 = vadd.f32 %v1103_v38, %v406_v27  ;;  %929 = vmatmul.mubr.bf16.gmra.mrb[20].mxu1 %v490_v22  ;;  %v473_v33 = vmax.f32 %v441_v26, 0.0 }
 0x12b   :  { %v440_v32 = vadd.f32 %v1103_v38, %v404_v30  ;;  %v471_v35 = vmax.f32 %v439_v29, 0.0 }
 0x12c   :  { %v474_v34 = vmax.f32 %v442_v31, 0.0 }
 0x12d   :  { %v472_v36 = vmax.f32 %v440_v32, 0.0  ;;  %v890_v39 = vpop.f32.mrb[28].mxu0 }
 0x12e   :  { %v409_v40 = vmul.f32 %v890_v39, %v1101_v37  ;;  %v359_v41 = vpop.f32.mrb[29].mxu0  ;;  %v492_v42 = vpack.c.bf16 %v474_v34, %v473_v33 }
 0x12f   :  { %v407_v43 = vmul.f32 %v1101_v37, %v359_v41  ;;  %v891_v44 = vpop.f32.mrb[30].mxu0  ;;  %v491_v45 = vpack.c.bf16 %v472_v36, %v471_v35 }
 0x130   :  { %v445_v46 = vadd.f32 %v1103_v38, %v409_v40  ;;  %v410_v47 = vmul.f32 %v891_v44, %v1101_v37  ;;  %v362_v48 = vpop.f32.mrb[31].mxu0 }
 0x131   :  { %v443_v49 = vadd.f32 %v1103_v38, %v407_v43  ;;  %v408_v50 = vmul.f32 %v1101_v37, %v362_v48  ;;  %932 = vmatprep.mubr.bf16.mxu1 %v491_v45 }
 0x132   :  { %v446_v51 = vadd.f32 %v1103_v38, %v410_v47  ;;  %933 = vmatmul.mubr.bf16.gmra.mrb[24].mxu1 %v492_v42  ;;  %v477_v53 = vmax.f32 %v445_v46, 0.0 }
 0x133   :  { %v444_v52 = vadd.f32 %v1103_v38, %v408_v50  ;;  %v475_v55 = vmax.f32 %v443_v49, 0.0 }
 0x134   :  { %v478_v54 = vmax.f32 %v446_v51, 0.0 }
 0x135   :  { %v476_v56 = vmax.f32 %v444_v52, 0.0 }
 0x136   :  { %v494_v57 = vpack.c.bf16 %v478_v54, %v477_v53 }
 0x137   :  { %v493_v58 = vpack.c.bf16 %v476_v56, %v475_v55 }
 0x139   :  { %936 = vmatprep.mubr.bf16.mxu1 %v493_v58 }
 0x13a   :  { %937 = vmatmul.mubr.bf16.gmra.mrb[28].mxu1 %v494_v57 }
 0x1d5   :  { %v910_v37 = vpop.f32.mrb[0].mxu1 }
 0x1d6   :  { %v609_v60 = vadd.f32 %v910_v37, %v1172_v59  ;;  %v600_v61 = vpop.f32.mrb[1].mxu1 }
 0x1d7   :  { %v601_v62 = vadd.f32 %v1172_v59, %v600_v61  ;;  %v911_v38 = vpop.f32.mrb[2].mxu1 }
 0x1d8   :  { %729 = vst [vmem:[%s1307_s5 + $0x10] sm:$0xff] %v609_v60  ;;  %v612_v63 = vadd.f32 %v911_v38, %v1172_v59  ;;  %v603_v0 = vpop.f32.mrb[3].mxu1 }
 0x1d9   :  { %727 = vst [vmem:[%s1307_s5] sm:$0xff] %v601_v62  ;;  %v604_v1 = vadd.f32 %v1172_v59, %v603_v0 }
 0x1da   :  { %730 = vst [vmem:[%s1307_s5 + $0x18] sm:$0xff] %v612_v63 }
 0x1db   :  { %728 = vst [vmem:[%s1307_s5 + $0x8] sm:$0xff] %v604_v1 }
 0x1dd   :  { %v914_v2 = vpop.f32.mrb[4].mxu1 }
 0x1de   :  { %v625_v3 = vadd.f32 %v914_v2, %v1172_v59  ;;  %v616_v4 = vpop.f32.mrb[5].mxu1 }
 0x1df   :  { %v617_v5 = vadd.f32 %v1172_v59, %v616_v4  ;;  %v915_v6 = vpop.f32.mrb[6].mxu1 }
 0x1e0   :  { %733 = vst [vmem:[%s1307_s5 + $0x30] sm:$0xff] %v625_v3  ;;  %v628_v7 = vadd.f32 %v915_v6, %v1172_v59  ;;  %v619_v8 = vpop.f32.mrb[7].mxu1 }
 0x1e1   :  { %731 = vst [vmem:[%s1307_s5 + $0x20] sm:$0xff] %v617_v5  ;;  %v620_v9 = vadd.f32 %v1172_v59, %v619_v8 }
 0x1e2   :  { %734 = vst [vmem:[%s1307_s5 + $0x38] sm:$0xff] %v628_v7 }
 0x1e3   :  { %732 = vst [vmem:[%s1307_s5 + $0x28] sm:$0xff] %v620_v9 }
 0x1e5   :  { %v918_v10 = vpop.f32.mrb[8].mxu1 }
 0x1e6   :  { %v641_v11 = vadd.f32 %v918_v10, %v1172_v59  ;;  %v632_v12 = vpop.f32.mrb[9].mxu1 }
 0x1e7   :  { %v633_v13 = vadd.f32 %v1172_v59, %v632_v12  ;;  %v919_v14 = vpop.f32.mrb[10].mxu1 }
 0x1e8   :  { %737 = vst [vmem:[%s1307_s5 + $0x50] sm:$0xff] %v641_v11  ;;  %v644_v15 = vadd.f32 %v919_v14, %v1172_v59  ;;  %v635_v16 = vpop.f32.mrb[11].mxu1 }
 0x1e9   :  { %735 = vst [vmem:[%s1307_s5 + $0x40] sm:$0xff] %v633_v13  ;;  %v636_v17 = vadd.f32 %v1172_v59, %v635_v16 }
 0x1ea   :  { %738 = vst [vmem:[%s1307_s5 + $0x58] sm:$0xff] %v644_v15 }
 0x1eb   :  { %736 = vst [vmem:[%s1307_s5 + $0x48] sm:$0xff] %v636_v17 }
 0x1ed   :  { %v922_v18 = vpop.f32.mrb[12].mxu1 }
 0x1ee   :  { %v657_v19 = vadd.f32 %v922_v18, %v1172_v59  ;;  %v648_v20 = vpop.f32.mrb[13].mxu1 }
 0x1ef   :  { %v649_v21 = vadd.f32 %v1172_v59, %v648_v20  ;;  %v923_v22 = vpop.f32.mrb[14].mxu1 }
 0x1f0   :  { %741 = vst [vmem:[%s1307_s5 + $0x70] sm:$0xff] %v657_v19  ;;  %v660_v23 = vadd.f32 %v923_v22, %v1172_v59  ;;  %v651_v24 = vpop.f32.mrb[15].mxu1 }
 0x1f1   :  { %739 = vst [vmem:[%s1307_s5 + $0x60] sm:$0xff] %v649_v21  ;;  %v652_v25 = vadd.f32 %v1172_v59, %v651_v24 }
 0x1f2   :  { %742 = vst [vmem:[%s1307_s5 + $0x78] sm:$0xff] %v660_v23 }
 0x1f3   :  { %740 = vst [vmem:[%s1307_s5 + $0x68] sm:$0xff] %v652_v25 }
 0x1f5   :  { %v926_v26 = vpop.f32.mrb[16].mxu1 }
 0x1f6   :  { %v673_v27 = vadd.f32 %v926_v26, %v1172_v59  ;;  %v664_v28 = vpop.f32.mrb[17].mxu1 }
 0x1f7   :  { %v665_v29 = vadd.f32 %v1172_v59, %v664_v28  ;;  %v927_v30 = vpop.f32.mrb[18].mxu1 }
 0x1f8   :  { %745 = vst [vmem:[%s1307_s5 + $0x90] sm:$0xff] %v673_v27  ;;  %v676_v31 = vadd.f32 %v927_v30, %v1172_v59  ;;  %v667_v32 = vpop.f32.mrb[19].mxu1 }
 0x1f9   :  { %743 = vst [vmem:[%s1307_s5 + $0x80] sm:$0xff] %v665_v29  ;;  %v668_v33 = vadd.f32 %v1172_v59, %v667_v32 }
 0x1fa   :  { %746 = vst [vmem:[%s1307_s5 + $0x98] sm:$0xff] %v676_v31 }
 0x1fb   :  { %744 = vst [vmem:[%s1307_s5 + $0x88] sm:$0xff] %v668_v33 }
 0x1fd   :  { %v930_v34 = vpop.f32.mrb[20].mxu1 }
 0x1fe   :  { %v689_v35 = vadd.f32 %v930_v34, %v1172_v59  ;;  %v680_v36 = vpop.f32.mrb[21].mxu1 }
 0x1ff   :  { %v681_v39 = vadd.f32 %v1172_v59, %v680_v36  ;;  %v931_v40 = vpop.f32.mrb[22].mxu1 }
 0x200   :  { %749 = vst [vmem:[%s1307_s5 + $0xb0] sm:$0xff] %v689_v35  ;;  %v692_v41 = vadd.f32 %v931_v40, %v1172_v59  ;;  %v683_v42 = vpop.f32.mrb[23].mxu1 }
 0x201   :  { %747 = vst [vmem:[%s1307_s5 + $0xa0] sm:$0xff] %v681_v39  ;;  %v684_v43 = vadd.f32 %v1172_v59, %v683_v42 }
 0x202   :  { %750 = vst [vmem:[%s1307_s5 + $0xb8] sm:$0xff] %v692_v41 }
 0x203   :  { %748 = vst [vmem:[%s1307_s5 + $0xa8] sm:$0xff] %v684_v43 }
 0x205   :  { %v934_v44 = vpop.f32.mrb[24].mxu1 }
 0x206   :  { %v705_v45 = vadd.f32 %v934_v44, %v1172_v59  ;;  %v696_v46 = vpop.f32.mrb[25].mxu1 }
 0x207   :  { %v697_v47 = vadd.f32 %v1172_v59, %v696_v46  ;;  %v935_v48 = vpop.f32.mrb[26].mxu1 }
 0x208   :  { %753 = vst [vmem:[%s1307_s5 + $0xd0] sm:$0xff] %v705_v45  ;;  %v708_v49 = vadd.f32 %v935_v48, %v1172_v59  ;;  %v699_v50 = vpop.f32.mrb[27].mxu1 }
 0x209   :  { %751 = vst [vmem:[%s1307_s5 + $0xc0] sm:$0xff] %v697_v47  ;;  %v700_v51 = vadd.f32 %v1172_v59, %v699_v50 }
 0x20a   :  { %754 = vst [vmem:[%s1307_s5 + $0xd8] sm:$0xff] %v708_v49 }
 0x20b   :  { %752 = vst [vmem:[%s1307_s5 + $0xc8] sm:$0xff] %v700_v51 }
 0x20d   :  { %v938_v52 = vpop.f32.mrb[28].mxu1 }
 0x20e   :  { %v721_v53 = vadd.f32 %v938_v52, %v1172_v59  ;;  %v712_v54 = vpop.f32.mrb[29].mxu1 }
 0x20f   :  { %v713_v55 = vadd.f32 %v1172_v59, %v712_v54  ;;  %v939_v56 = vpop.f32.mrb[30].mxu1 }
 0x210   :  { %757 = vst [vmem:[%s1307_s5 + $0xf0] sm:$0xff] %v721_v53  ;;  %v724_v57 = vadd.f32 %v939_v56, %v1172_v59  ;;  %v715_v58 = vpop.f32.mrb[31].mxu1 }
 0x211   :  { %755 = vst [vmem:[%s1307_s5 + $0xe0] sm:$0xff] %v713_v55  ;;  %v716_v37 = vadd.f32 %v1172_v59, %v715_v58 }
 0x212   :  { %758 = vst [vmem:[%s1307_s5 + $0xf8] sm:$0xff] %v724_v57 }
 0x213   :  { %756 = vst [vmem:[%s1307_s5 + $0xe8] sm:$0xff] %v716_v37 }

</bundles_post_ra>
